<compile_context>
chip_gen: v6e
topology: v6e:2x2x1
jax: 0.10.0
libtpu: 0.0.40
codegen_flags: <defaults>
</compile_context>

<pallas_src>
import jax
import jax.numpy as jnp
from jax import lax
from jax.experimental import pallas as pl
from jax.experimental.pallas import tpu as pltpu

_LANE_TILE = 512      # lanes per reduction step (multiple of 128)
_MAX_ROW_TILE = 1024  # sublane rows per step; 1024x512 f32 = 2 MiB per input
_OUT_ROWS = 8
_OUT_LANES = 128


def _round_up(x, m):
    return ((x + m - 1) // m) * m


def _make_kernel(row_tile, rows, k_inner, needs_mask, binary_labels):
    """Builds the per-sample partial-sum kernel (closure over static params)."""

    def kernel(p_ref, l_ref, out_ref, acc_ref):
        # p_ref / l_ref : (1, row_tile, LANE_TILE) input blocks
        # out_ref       : (1, 1, 8, 128) packed per-sample scalars
        # acc_ref       : (8, LANE_TILE) f32 per-lane partial-sum accumulator
        ki = pl.program_id(2)

        @pl.when(ki == 0)
        def _():
            acc_ref[...] = jnp.zeros_like(acc_ref)

        p = p_ref[...].astype(jnp.float32)
        lab = l_ref[...].astype(jnp.float32)

        if needs_mask:
            # Ragged last block: mask rows beyond the valid range so garbage
            # from the out-of-bounds block region never enters the sums.
            blk = pl.program_id(1) * k_inner + ki
            limit = rows - blk * row_tile
            row_ids = lax.broadcasted_iota(jnp.int32, p.shape, 1)
            valid = row_ids < limit
            zero = jnp.float32(0.0)
            p = jnp.where(valid, p, zero)
            lab = jnp.where(valid, lab, zero)

        one = jnp.float32(1.0)
        p_l = p * lab  # reused for tp / fp / fn terms

        if binary_labels:
            # One log per element; exact for labels in {0,1} (and for the
            # masked / padded zeros: arg = 1 -> bce = 0).
            arg = jnp.where(lab >= 0.5, p, one - p)
            bce = -jnp.maximum(jnp.log(arg), jnp.float32(-100.0))
        else:
            # Soft-label path: PyTorch BCE with the log clamp at -100.
            log_p = jnp.maximum(jnp.log(p), jnp.float32(-100.0))
            log_1mp = jnp.maximum(jnp.log(one - p), jnp.float32(-100.0))
            bce = -(lab * log_p + (one - lab) * log_1mp)

        def rsum(x):  # (1, row_tile, LANE_TILE) -> (1, LANE_TILE)
            return jnp.sum(x, axis=1)

        # Accumulate directly into rows 0..5 (no concatenate staging).
        acc_ref[0:1, :] += rsum(p_l)                # tp   = sum(p * l)
        acc_ref[1:2, :] += rsum((p - p_l) ** 2)     # fp   = sum((p*(1-l))^2)
        acc_ref[2:3, :] += rsum((lab - p_l) ** 2)   # fn   = sum(((1-p)*l)^2)
        acc_ref[3:4, :] += rsum(bce)                # sum(bce)
        acc_ref[4:5, :] += rsum(lab * bce)          # sum(l * bce)
        acc_ref[5:6, :] += rsum(lab)                # sum(l)

        @pl.when(ki == k_inner - 1)
        def _():
            totals = jnp.sum(acc_ref[...], axis=1, keepdims=True)  # (8, 1)
            out_ref[...] = jnp.broadcast_to(totals[None, None], out_ref.shape)

    return kernel


def _per_sample_sums(preds_nchw, labels_nchw, binary_labels=True):
    """Returns (N, 8, 128) f32; rows 0..5 = tp, fp, fn, sum_bce, sum(l*bce), sum(l)."""
    N = preds_nchw.shape[0]
    chw = 1
    for d in preds_nchw.shape[1:]:
        chw *= d

    p = preds_nchw.reshape(N, chw)
    lab = labels_nchw.reshape(N, chw)

    rows_raw = pl.cdiv(chw, _LANE_TILE)
    if rows_raw <= _MAX_ROW_TILE:
        # Small sample: one reduction step; round rows to a multiple of 8 so
        # every elementwise op runs on full vregs (cheap pad at this size).
        rows = _round_up(max(rows_raw, 1), 8)
        row_tile = rows
    else:
        # Large sample: fixed 1024-row tile (multiple of 32 -> bf16/int8 safe),
        # ragged last block masked in-kernel -> no row-padding HBM pass.
        rows = rows_raw
        row_tile = _MAX_ROW_TILE

    padded_chw = rows * _LANE_TILE
    if padded_chw != chw:
        # Zero padding contributes exactly zero to every accumulated sum.
        # TODO(synk): for huge chw not divisible by 512 this copy could also be
        # avoided with in-kernel lane masking.
        p = jnp.pad(p, ((0, 0), (0, padded_chw - chw)))
        lab = jnp.pad(lab, ((0, 0), (0, padded_chw - chw)))
    p = p.reshape(N, rows, _LANE_TILE)
    lab = lab.reshape(N, rows, _LANE_TILE)

    k_steps = pl.cdiv(rows, row_tile)
    # Split the reduction axis so both v7x TensorCores are busy when N == 1.
    if N == 1 and k_steps >= 2 and k_steps % 2 == 0:
        k_outer = 2
    else:
        k_outer = 1
    k_inner = k_steps // k_outer
    needs_mask = (rows % row_tile) != 0

    kernel = _make_kernel(row_tile, rows, k_inner, needs_mask, binary_labels)

    in_spec = pl.BlockSpec((1, row_tile, _LANE_TILE),
                           lambda i, ko, ki: (i, ko * k_inner + ki, 0))
    out_spec = pl.BlockSpec((1, 1, _OUT_ROWS, _OUT_LANES),
                            lambda i, ko, ki: (i, ko, 0, 0))

    sums = pl.pallas_call(
        kernel,
        out_shape=jax.ShapeDtypeStruct((N, k_outer, _OUT_ROWS, _OUT_LANES),
                                       jnp.float32),
        grid_spec=pltpu.PrefetchScalarGridSpec(
            num_scalar_prefetch=0,
            grid=(N, k_outer, k_inner),
            in_specs=[in_spec, in_spec],
            out_specs=out_spec,
            scratch_shapes=[pltpu.VMEM((_OUT_ROWS, _LANE_TILE), jnp.float32)],
        ),
        compiler_params=pltpu.CompilerParams(
            dimension_semantics=("parallel", "parallel", "arbitrary")),
    )(p, lab)

    return jnp.sum(sums, axis=1)  # combine per-k_outer partials -> (N, 8, 128)


def auto_weighted_tversky_wce_focal_loss(preds, labels, awl_params, *,
                                         binary_labels=True):
    """Forward pass equivalent of AutoWeighted_Tversky_and_WCE_and_Focal_loss."""
    sums = _per_sample_sums(preds, labels, binary_labels)  # (N, 8, 128)
    tp = sums[:, 0, 0]
    fp = sums[:, 1, 0]
    fn = sums[:, 2, 0]
    bce = sums[:, 3, 0]
    lbce = sums[:, 4, 0]
    lsum = sums[:, 5, 0]

    # --- focal_tversky_loss_plus_plus (gamma=2, beta=0.7, delta=0.75) ---
    eps = jnp.float32(1e-7)
    beta_t = jnp.float32(0.7)
    delta = jnp.float32(0.75)
    tversky = (tp + (1.0 - beta_t) * fp + beta_t * fn + eps) / (tp + eps)
    temp = jnp.minimum(tversky ** delta, jnp.float32(50.0))
    tv_loss = jnp.sum(temp)

    # --- weighted_bce_loss ---
    # beta = 1 - mean(labels); weights = (1-beta) + (2*beta-1)*labels
    #       = mean_l + (1 - 2*mean_l)*labels
    # => sum(weights*bce) = mean_l*sum(bce) + (1-2*mean_l)*sum(labels*bce)
    total_elems = jnp.float32(preds.size)
    mean_l = jnp.sum(lsum) / total_elems
    sum_bce = jnp.sum(bce)
    sum_lbce = jnp.sum(lbce)
    wce_loss = mean_l * sum_bce + (1.0 - 2.0 * mean_l) * sum_lbce

    # --- focal_loss (alpha=0.25, gamma=2, reduction='sum') ---
    # Matches the reference literally: pt = exp(-sum-reduced BCE).
    alpha = jnp.float32(0.25)
    gamma_f = jnp.float32(2.0)
    pt = jnp.exp(-sum_bce)
    fl_loss = alpha * (1.0 - pt) ** gamma_f * sum_bce

    # --- AutomaticWeightedLoss(3), params initialized to ones ---
    losses = jnp.stack([tv_loss, wce_loss, fl_loss])
    p2 = awl_params.astype(jnp.float32) ** 2
    result = jnp.sum(0.5 / p2 * losses + jnp.log(1.0 + p2))
    return result


if __name__ == "__main__":
    key = jax.random.PRNGKey(0)
    k1, k2 = jax.random.split(key)
    N, C, H, W = 2, 4, 16, 16

    # preds must be probabilities in (0,1); labels are binary masks.
    # Labels are fed as bf16 (exact for {0,1}) to halve their HBM traffic;
    # preds stay f32 so the math matches the PyTorch reference exactly.
    preds = jax.nn.sigmoid(jax.random.normal(k1, (N, C, H, W), jnp.float32))
    labels = (jax.random.uniform(k2, (N, C, H, W)) > 0.5).astype(jnp.bfloat16)

    # AutomaticWeightedLoss params: torch.ones(3) — deterministic init.
    awl_params = jnp.ones((3,), jnp.float32)

    loss_fn = jax.jit(auto_weighted_tversky_wce_focal_loss,
                      static_argnames=("binary_labels",))
    out = loss_fn(preds, labels, awl_params)
    jax.block_until_ready(out)
    print("KERNEL_OK")
</pallas_src>

<mosaic_0001>
module attributes {stable_mosaic.version = 11 : i64} {
  func.func @kernel(%arg0: i32, %arg1: i32, %arg2: i32, %arg3: memref<1x8x512xf32, #tpu.memory_space<vmem>>, %arg4: memref<1x8x512xbf16, #tpu.memory_space<vmem>>, %arg5: memref<1x1x8x128xf32, #tpu.memory_space<vmem>>, %arg6: memref<8x512xf32, #tpu.memory_space<vmem>>) attributes {dimension_semantics = [#tpu.dimension_semantics<parallel>, #tpu.dimension_semantics<parallel>, #tpu.dimension_semantics<arbitrary>], iteration_bounds = array<i64: 2, 1, 1>, scalar_prefetch = 0 : i64, scratch_operands = 1 : i64, tpu.core_type = #tpu.core_type<tc>, window_params = [{transform_indices = @transform_0, window_bounds = array<i64: 1, 8, 512>}, {transform_indices = @transform_1, window_bounds = array<i64: 1, 8, 512>}, {transform_indices = @transform_2, window_bounds = array<i64: 1, 1, 8, 128>}]} {
    %c0_i32 = arith.constant 0 : i32
    %0 = arith.cmpi eq, %arg2, %c0_i32 : i32
    %1 = arith.extui %0 : i1 to i32
    %c0_i32_0 = arith.constant 0 : i32
    %2 = arith.cmpi ne, %1, %c0_i32_0 : i32
    scf.if %2 {
      %cst_36 = arith.constant 0.000000e+00 : f32
      %49 = vector.broadcast %cst_36 : f32 to vector<8x512xf32>
      %c0_37 = arith.constant 0 : index
      %c0_38 = arith.constant 0 : index
      %50 = vector.load %arg6[%c0_37, %c0_38] : memref<8x512xf32, #tpu.memory_space<vmem>>, vector<8x512xf32>
      tpu.vector_store %arg6[%c0_37, %c0_38], %49 {strides = array<i32>} : memref<8x512xf32, #tpu.memory_space<vmem>>, vector<8x512xf32>,
    } else {
    }
    %c0 = arith.constant 0 : index
    %c0_1 = arith.constant 0 : index
    %c0_2 = arith.constant 0 : index
    %3 = vector.load %arg3[%c0, %c0_1, %c0_2] : memref<1x8x512xf32, #tpu.memory_space<vmem>>, vector<1x8x512xf32>
    %c0_3 = arith.constant 0 : index
    %c0_4 = arith.constant 0 : index
    %c0_5 = arith.constant 0 : index
    %4 = vector.load %arg4[%c0_3, %c0_4, %c0_5] : memref<1x8x512xbf16, #tpu.memory_space<vmem>>, vector<1x8x512xbf16>
    %5 = arith.extf %4 : vector<1x8x512xbf16> to vector<1x8x512xf32>
    %6 = arith.mulf %3, %5 : vector<1x8x512xf32>
    %cst = arith.constant 5.000000e-01 : f32
    %7 = vector.broadcast %cst : f32 to vector<1x8x512xf32>
    %8 = arith.cmpf oge, %5, %7 : vector<1x8x512xf32>
    %cst_6 = arith.constant 1.000000e+00 : f32
    %9 = vector.broadcast %cst_6 : f32 to vector<1x8x512xf32>
    %10 = arith.subf %9, %3 : vector<1x8x512xf32>
    %11 = arith.select %8, %3, %10 : vector<1x8x512xi1>, vector<1x8x512xf32>
    %12 = math.log %11 : vector<1x8x512xf32>
    %cst_7 = arith.constant -1.000000e+02 : f32
    %13 = vector.broadcast %cst_7 : f32 to vector<1x8x512xf32>
    %14 = arith.maximumf %12, %13 : vector<1x8x512xf32>
    %cst_8 = arith.constant 0.000000e+00 : f32
    %15 = vector.broadcast %cst_8 : f32 to vector<1x8x512xf32>
    %16 = arith.subf %15, %14 : vector<1x8x512xf32>
    %c0_9 = arith.constant 0 : index
    %c0_10 = arith.constant 0 : index
    %17 = vector.load %arg6[%c0_9, %c0_10] : memref<8x512xf32, #tpu.memory_space<vmem>>, vector<1x512xf32>
    %cst_11 = arith.constant dense<0.000000e+00> : vector<1x512xf32>
    %18 = vector.multi_reduction <add>, %6, %cst_11 [1] : vector<1x8x512xf32> to vector<1x512xf32>
    %19 = arith.addf %17, %18 : vector<1x512xf32>
    %c0_12 = arith.constant 0 : index
    %c0_13 = arith.constant 0 : index
    %20 = vector.load %arg6[%c0_12, %c0_13] : memref<8x512xf32, #tpu.memory_space<vmem>>, vector<1x512xf32>
    tpu.vector_store %arg6[%c0_12, %c0_13], %19 {strides = array<i32>} : memref<8x512xf32, #tpu.memory_space<vmem>>, vector<1x512xf32>,
    %c1 = arith.constant 1 : index
    %c0_14 = arith.constant 0 : index
    %21 = vector.load %arg6[%c1, %c0_14] : memref<8x512xf32, #tpu.memory_space<vmem>>, vector<1x512xf32>
    %22 = arith.subf %3, %6 : vector<1x8x512xf32>
    %23 = arith.mulf %22, %22 : vector<1x8x512xf32>
    %cst_15 = arith.constant dense<0.000000e+00> : vector<1x512xf32>
    %24 = vector.multi_reduction <add>, %23, %cst_15 [1] : vector<1x8x512xf32> to vector<1x512xf32>
    %25 = arith.addf %21, %24 : vector<1x512xf32>
    %c1_16 = arith.constant 1 : index
    %c0_17 = arith.constant 0 : index
    %26 = vector.load %arg6[%c1_16, %c0_17] : memref<8x512xf32, #tpu.memory_space<vmem>>, vector<1x512xf32>
    tpu.vector_store %arg6[%c1_16, %c0_17], %25 {strides = array<i32>} : memref<8x512xf32, #tpu.memory_space<vmem>>, vector<1x512xf32>,
    %c2 = arith.constant 2 : index
    %c0_18 = arith.constant 0 : index
    %27 = vector.load %arg6[%c2, %c0_18] : memref<8x512xf32, #tpu.memory_space<vmem>>, vector<1x512xf32>
    %28 = arith.subf %5, %6 : vector<1x8x512xf32>
    %29 = arith.mulf %28, %28 : vector<1x8x512xf32>
    %cst_19 = arith.constant dense<0.000000e+00> : vector<1x512xf32>
    %30 = vector.multi_reduction <add>, %29, %cst_19 [1] : vector<1x8x512xf32> to vector<1x512xf32>
    %31 = arith.addf %27, %30 : vector<1x512xf32>
    %c2_20 = arith.constant 2 : index
    %c0_21 = arith.constant 0 : index
    %32 = vector.load %arg6[%c2_20, %c0_21] : memref<8x512xf32, #tpu.memory_space<vmem>>, vector<1x512xf32>
    tpu.vector_store %arg6[%c2_20, %c0_21], %31 {strides = array<i32>} : memref<8x512xf32, #tpu.memory_space<vmem>>, vector<1x512xf32>,
    %c3 = arith.constant 3 : index
    %c0_22 = arith.constant 0 : index
    %33 = vector.load %arg6[%c3, %c0_22] : memref<8x512xf32, #tpu.memory_space<vmem>>, vector<1x512xf32>
    %cst_23 = arith.constant dense<0.000000e+00> : vector<1x512xf32>
    %34 = vector.multi_reduction <add>, %16, %cst_23 [1] : vector<1x8x512xf32> to vector<1x512xf32>
    %35 = arith.addf %33, %34 : vector<1x512xf32>
    %c3_24 = arith.constant 3 : index
    %c0_25 = arith.constant 0 : index
    %36 = vector.load %arg6[%c3_24, %c0_25] : memref<8x512xf32, #tpu.memory_space<vmem>>, vector<1x512xf32>
    tpu.vector_store %arg6[%c3_24, %c0_25], %35 {strides = array<i32>} : memref<8x512xf32, #tpu.memory_space<vmem>>, vector<1x512xf32>,
    %c4 = arith.constant 4 : index
    %c0_26 = arith.constant 0 : index
    %37 = vector.load %arg6[%c4, %c0_26] : memref<8x512xf32, #tpu.memory_space<vmem>>, vector<1x512xf32>
    %38 = arith.mulf %5, %16 : vector<1x8x512xf32>
    %cst_27 = arith.constant dense<0.000000e+00> : vector<1x512xf32>
    %39 = vector.multi_reduction <add>, %38, %cst_27 [1] : vector<1x8x512xf32> to vector<1x512xf32>
    %40 = arith.addf %37, %39 : vector<1x512xf32>
    %c4_28 = arith.constant 4 : index
    %c0_29 = arith.constant 0 : index
    %41 = vector.load %arg6[%c4_28, %c0_29] : memref<8x512xf32, #tpu.memory_space<vmem>>, vector<1x512xf32>
    tpu.vector_store %arg6[%c4_28, %c0_29], %40 {strides = array<i32>} : memref<8x512xf32, #tpu.memory_space<vmem>>, vector<1x512xf32>,
    %c5 = arith.constant 5 : index
    %c0_30 = arith.constant 0 : index
    %42 = vector.load %arg6[%c5, %c0_30] : memref<8x512xf32, #tpu.memory_space<vmem>>, vector<1x512xf32>
    %cst_31 = arith.constant dense<0.000000e+00> : vector<1x512xf32>
    %43 = vector.multi_reduction <add>, %5, %cst_31 [1] : vector<1x8x512xf32> to vector<1x512xf32>
    %44 = arith.addf %42, %43 : vector<1x512xf32>
    %c5_32 = arith.constant 5 : index
    %c0_33 = arith.constant 0 : index
    %45 = vector.load %arg6[%c5_32, %c0_33] : memref<8x512xf32, #tpu.memory_space<vmem>>, vector<1x512xf32>
    tpu.vector_store %arg6[%c5_32, %c0_33], %44 {strides = array<i32>} : memref<8x512xf32, #tpu.memory_space<vmem>>, vector<1x512xf32>,
    %c0_i32_34 = arith.constant 0 : i32
    %46 = arith.cmpi eq, %arg2, %c0_i32_34 : i32
    %47 = arith.extui %46 : i1 to i32
    %c0_i32_35 = arith.constant 0 : i32
    %48 = arith.cmpi ne, %47, %c0_i32_35 : i32
    scf.if %48 {
      %c0_36 = arith.constant 0 : index
      %c0_37 = arith.constant 0 : index
      %49 = vector.load %arg6[%c0_36, %c0_37] : memref<8x512xf32, #tpu.memory_space<vmem>>, vector<8x512xf32>
      %cst_38 = arith.constant dense<0.000000e+00> : vector<8xf32>
      %50 = vector.multi_reduction <add>, %49, %cst_38 [1] : vector<8x512xf32> to vector<8xf32>
      %51 = vector.shape_cast %50 : vector<8xf32> to vector<8x1xf32>
      %52 = vector.shape_cast %51 : vector<8x1xf32> to vector<1x1x8x1xf32>
      %53 = vector.shape_cast %52 : vector<1x1x8x1xf32> to vector<1x1x8x1xf32>
      %54 = vector.broadcast %53 : vector<1x1x8x1xf32> to vector<1x1x8x128xf32>
      %c0_39 = arith.constant 0 : index
      %c0_40 = arith.constant 0 : index
      %c0_41 = arith.constant 0 : index
      %c0_42 = arith.constant 0 : index
      %55 = vector.load %arg5[%c0_39, %c0_40, %c0_41, %c0_42] : memref<1x1x8x128xf32, #tpu.memory_space<vmem>>, vector<1x1x8x128xf32>
      tpu.vector_store %arg5[%c0_39, %c0_40, %c0_41, %c0_42], %54 {strides = array<i32>} : memref<1x1x8x128xf32, #tpu.memory_space<vmem>>, vector<1x1x8x128xf32>,
    } else {
    }
    return
  }
  func.func @transform_0(%arg0: i32, %arg1: i32, %arg2: i32) -> (i32, i32, i32) {
    %c1_i32 = arith.constant 1 : i32
    %0 = arith.muli %arg1, %c1_i32 : i32
    %1 = arith.addi %0, %arg2 : i32
    %c0_i32 = arith.constant 0 : i32
    %c0_i32_0 = arith.constant 0 : i32
    return %arg0, %1, %c0_i32 : i32, i32, i32
  }
  func.func @transform_1(%arg0: i32, %arg1: i32, %arg2: i32) -> (i32, i32, i32) {
    %c1_i32 = arith.constant 1 : i32
    %0 = arith.muli %arg1, %c1_i32 : i32
    %1 = arith.addi %0, %arg2 : i32
    %c0_i32 = arith.constant 0 : i32
    %c0_i32_0 = arith.constant 0 : i32
    return %arg0, %1, %c0_i32 : i32, i32, i32
  }
  func.func @transform_2(%arg0: i32, %arg1: i32, %arg2: i32) -> (i32, i32, i32, i32) {
    %c0_i32 = arith.constant 0 : i32
    %c0_i32_0 = arith.constant 0 : i32
    %c0_i32_1 = arith.constant 0 : i32
    return %arg0, %arg1, %c0_i32, %c0_i32_0 : i32, i32, i32, i32
  }
}

</mosaic_0001>

<bundles_post_ra>
// kernel: auto_weighted_tversky_wce_focal_loss.1
= control target key start
LH: loop header
LB: loop body
LE: loop exit
PB: predicated region body
PF: predicated region fallthrough
CT: control target
= control target key end

     0   :  { %s858_s9 = smov 0   ;;  %s860_s10 = smov 0   ;;  %s1013_s0 = inlined_call_operand.vmem [shape: f32[2,8,512], index: 0, kind: input, shape index: {}]   ;;  %s1014_s1 = inlined_call_operand.vmem [shape: bf16[2,8,512], index: 1, kind: input, shape index: {}]   ;;  %s1015_s2 = inlined_call_operand.vmem [shape: f32[2,1,8,128], index: 2, kind: output, shape index: {}]  }
   0x1   :  { %s862_s11 = smov 0  }
   0x2 LB: > { %s31_s12 = sadd.s32 1, %s835_s10  ;;  %p773_p0 = scmp.ge.s32.totalorder %s839_s11, 1  ;;  %s839_s11 = sphi %s862_s11, %s12_s11   ;;  %s835_s10 = sphi %s860_s10, %s1019_s10   ;;  %s831_s9 = sphi %s858_s9, %s1018_s9  }
   0x3   : > { %p33_p1 = scmp.ge.s32.totalorder %s31_s12, 2  ;;  %p163_p2 = scmp.lt.s32.totalorder %s839_s11, 3 }
   0x5   : > { %s1021_s12 = smov (%p33_p1, %s31_s12), 0  ;;  %p164_p3 = pnand %p773_p0, %p163_p2 }
   0x6   : > { %p203_p4 = scmp.lt.s32.totalorder (!%p164_p3), %s831_s9, 1 }
   0x7   : > { %167 = sbr.rel (%p164_p3) target bundleno = 245 (0xf5), region = 28 }
   0xc   : > { %v841_v0 = vmov 0.0   ;;  %v842_v1 = vmov 1966171168   ;;  %v315_v3 = vlaneseq  ;;  %s1023_s9 = smov (!%p203_p4, %s831_s9), 1 }
   0xd   : > { %235 = vst [vmem:[#allocation2] sm:$0xff] %v841_v0  ;;  %236 = vst [vmem:[#allocation2 + $0x8] sm:$0xff] %v841_v0  ;;  %v313_v2 = vunpack.c.l.s4 %v842_v1  ;;  %s781_s13 = sshll.u32 %s1023_s9, 5  ;;  %s782_s14 = sshll.u32 %s1023_s9, 4 }
   0xe   : > { %237 = vst [vmem:[#allocation2 + $0x10] sm:$0xff] %v841_v0  ;;  %238 = vst [vmem:[#allocation2 + $0x18] sm:$0xff] %v841_v0  ;;  %s211_s17 = scalar_lea.vmem %s1013_s0, %s781_s13  ;;  %s222_s20 = scalar_lea.vmem %s1014_s1, %s782_s14  ;;  %v316_v5 = vshrl.u32 %v315_v3, 7  ;;  %vm926_vm4 = vcmp.lt.s32.totalorder %v315_v3, 512 }
   0xf   : > { %v314_v4 = vunpack.c.0.s8 %v313_v2  ;;  %v239_v6 = vld [vmem:[%s211_s17] sm:$0xff]  ;;  %v240_v7 = vld [vmem:[%s211_s17 + $0x8] sm:$0xff]  ;;  %v241_v8 = vld [vmem:[%s211_s17 + $0x10] sm:$0xff]  ;;  %s778_s21 = sshll.u32 %s1023_s9, 3 }
  0x10   : > { %v242_v9 = vld [vmem:[%s211_s17 + $0x18] sm:$0xff]  ;;  %v243_v10 = vld [vmem:[%s222_s20] sm:$0xff]  ;;  %v244_v11 = vld [vmem:[%s222_s20 + $0x8] sm:$0xff]  ;;  %v257_v12 = vsub.f32 1.0, %v239_v6  ;;  %v258_v13 = vsub.f32 1.0, %v240_v7  ;;  %v259_v14 = vsub.f32 1.0, %v241_v8  ;;  %s230_s24 = scalar_lea.vmem %s1015_s2, %s778_s21 }
  0x11   : > { %v887_v15 = vunpack.c.l.bf16 %v243_v10  ;;  %v889_v16 = vunpack.c.h.bf16 %v243_v10  ;;  %v891_v17 = vunpack.c.l.bf16 %v244_v11  ;;  %v893_v18 = vunpack.c.h.bf16 %v244_v11 }
  0x12   : > { %v260_v19 = vsub.f32 1.0, %v242_v9  ;;  %v895_v20 = vsub.s32 %v314_v4, %v316_v5 }
  0x13   : > { %v898_v21 = vmul.f32 %v887_v15, %v239_v6  ;;  %v901_v22 = vmul.f32 %v889_v16, %v240_v7  ;;  %v904_v23 = vmul.f32 %v891_v17, %v241_v8  ;;  %v907_v24 = vmul.f32 %v893_v18, %v242_v9 }
  0x14   : > { %vm253_vm0 = vcmp.ge.f32.partialorder %v887_v15, 0.5  ;;  %vm254_vm1 = vcmp.ge.f32.partialorder %v889_v16, 0.5  ;;  %vm255_vm2 = vcmp.ge.f32.partialorder %v891_v17, 0.5  ;;  %vm256_vm3 = vcmp.ge.f32.partialorder %v893_v18, 0.5 }
  0x15   : > { %v261_v25 = vsel %vm253_vm0, %v239_v6, %v257_v12  ;;  %v262_v26 = vsel %vm254_vm1, %v240_v7, %v258_v13  ;;  %v263_v27 = vsel %vm255_vm2, %v241_v8, %v259_v14  ;;  %v264_v28 = vsel %vm256_vm3, %v242_v9, %v260_v19 }
  0x16   : > { %809 = vlog2.f32 %v261_v25  ;;  %v282_v29 = vrot.slane %v898_v21, 4  ;;  %v288_v30 = vrot.slane %v901_v22, 4  ;;  %v294_v31 = vrot.slane %v904_v23, 4 }
  0x17   : > { %811 = vlog2.f32 %v262_v26  ;;  %v300_v32 = vrot.slane %v907_v24, 4  ;;  %v344_v33 = vsub.f32 %v239_v6, %v898_v21  ;;  %v345_v34 = vsub.f32 %v240_v7, %v901_v22 }
  0x18   : > { %813 = vlog2.f32 %v263_v27  ;;  %v283_v35 = vadd.f32 %v282_v29, %v898_v21  ;;  %v289_v36 = vadd.f32 %v288_v30, %v901_v22  ;;  %v295_v37 = vadd.f32 %v294_v31, %v904_v23 }
  0x19   : > { %815 = vlog2.f32 %v264_v28  ;;  %v301_v38 = vadd.f32 %v300_v32, %v907_v24  ;;  %v346_v39 = vsub.f32 %v241_v8, %v904_v23  ;;  %v347_v40 = vsub.f32 %v242_v9, %v907_v24 }
  0x1a   : > { %v284_v41 = vrot.slane %v283_v35, 2  ;;  %v290_v42 = vrot.slane %v289_v36, 2  ;;  %v296_v43 = vrot.slane %v295_v37, 2  ;;  %v348_v44 = vmul.f32 %v344_v33, %v344_v33 }
  0x1b   : > { %v302_v45 = vrot.slane %v301_v38, 2  ;;  %v349_v46 = vmul.f32 %v345_v34, %v345_v34  ;;  %v350_v47 = vmul.f32 %v346_v39, %v346_v39  ;;  %v351_v48 = vmul.f32 %v347_v40, %v347_v40 }
  0x1c   : > { %v285_v49 = vadd.f32 %v284_v41, %v283_v35  ;;  %v291_v50 = vadd.f32 %v290_v42, %v289_v36  ;;  %v297_v51 = vadd.f32 %v296_v43, %v295_v37  ;;  %v352_v52 = vrot.slane %v348_v44, 4 }
  0x1d   : > { %v303_v53 = vadd.f32 %v302_v45, %v301_v38  ;;  %v358_v54 = vrot.slane %v349_v46, 4  ;;  %v364_v55 = vrot.slane %v350_v47, 4  ;;  %v370_v56 = vrot.slane %v351_v48, 4 }
  0x1e   : > { %v286_v57 = vrot.slane %v285_v49, 1  ;;  %v292_v58 = vrot.slane %v291_v50, 1  ;;  %v298_v59 = vrot.slane %v297_v51, 1  ;;  %v353_v60 = vadd.f32 %v352_v52, %v348_v44 }
  0x1f   : > { %v304_v61 = vrot.slane %v303_v53, 1  ;;  %v359_v62 = vadd.f32 %v358_v54, %v349_v46  ;;  %v365_v63 = vadd.f32 %v364_v55, %v350_v47  ;;  %v371_v0 = vadd.f32 %v370_v56, %v351_v48  ;;  %v281_v47 = vld [vmem:[#allocation2] ss:$8 sm:$0xf] }
  0x20   : > { %v287_v1 = vadd.f32 %v286_v57, %v285_v49  ;;  %v293_v2 = vadd.f32 %v292_v58, %v291_v50  ;;  %v299_v4 = vadd.f32 %v298_v59, %v297_v51  ;;  %v354_v5 = vrot.slane %v353_v60, 2 }
  0x21   : > { %v305_v6 = vadd.f32 %v304_v61, %v303_v53  ;;  %v360_v7 = vrot.slane %v359_v62, 2  ;;  %v366_v8 = vrot.slane %v365_v63, 2  ;;  %v372_v9 = vrot.slane %v371_v0, 2 }
  0x22   : > { %v310_v10 = vcombine.low %v287_v1, %v293_v2  ;;  %v355_v12 = vadd.f32 %v354_v5, %v353_v60  ;;  %v410_v13 = vsub.f32 %v887_v15, %v898_v21  ;;  %v411_v14 = vsub.f32 %v889_v16, %v901_v22 }
  0x23   : > { %v810_v19 = vpop.eup %809  ;;  %v311_v25 = vcombine.low %v299_v4, %v305_v6  ;;  %v361_v26 = vadd.f32 %v360_v7, %v359_v62  ;;  %v367_v27 = vadd.f32 %v366_v8, %v365_v63  ;;  %v373_v28 = vadd.f32 %v372_v9, %v371_v0  ;;  %v343_v9 = vld [vmem:[#allocation2 + $0x1] ss:$8 sm:$0xf] }
  0x24   : > { %v812_v29 = vpop.eup %811  ;;  %v266_v30 = vmul.f32 0.6931472, %v810_v19  ;;  %v318_v31 = vrot.slane %v310_v10, %v895_v20  ;;  %v356_v3 = vrot.slane %v355_v12, 1  ;;  %v412_v32 = vsub.f32 %v891_v17, %v904_v23 }
  0x25   : > { %v814_v33 = vpop.eup %813  ;;  %v268_v34 = vmul.f32 0.6931472, %v812_v29  ;;  %v325_v21 = vrot.slane %v311_v25, %v895_v20  ;;  %v362_v35 = vrot.slane %v361_v26, 1  ;;  %v368_v36 = vrot.slane %v367_v27, 1 }
  0x26   : > { %v816_v22 = vpop.eup %815  ;;  %v270_v37 = vmul.f32 0.6931472, %v814_v33  ;;  %v273_v38 = vmax.f32 %v266_v30, -100.0  ;;  %v357_v39 = vadd.f32 %v356_v3, %v355_v12  ;;  %v374_v40 = vrot.slane %v373_v28, 1 }
  0x27   : > { %v272_v41 = vmul.f32 0.6931472, %v816_v22  ;;  %v274_v42 = vmax.f32 %v268_v34, -100.0  ;;  %v326_v43 = vcombine.low %v318_v31, %v325_v21  ;;  %v363_v44 = vadd.f32 %v362_v35, %v361_v26 }
  0x28   : > { %v275_v45 = vmax.f32 %v270_v37, -100.0  ;;  %v938_v46 = vsub.f32 0.0, %v273_v38  ;;  %v369_v23 = vadd.f32 %v368_v36, %v367_v27  ;;  %v375_v48 = vadd.f32 %v374_v40, %v373_v28 }
  0x29   : > { %v276_v49 = vmax.f32 %v272_v41, -100.0  ;;  %v940_v50 = vsub.f32 0.0, %v274_v42  ;;  %v333_v51 = vrot.slane %v326_v43, %v895_v20  ;;  %v380_v52 = vcombine.low %v357_v39, %v363_v44 }
  0x2a   : > { %v943_v53 = vsub.f32 0.0, %v275_v45  ;;  %v381_v54 = vcombine.low %v369_v23, %v375_v48  ;;  %v413_v55 = vsub.f32 %v893_v18, %v907_v24  ;;  %v414_v56 = vmul.f32 %v410_v13, %v410_v13 }
  0x2b   : > { %v947_v57 = vsub.f32 0.0, %v276_v49  ;;  %v335_v58 = vadd.f32 %v333_v51, %v281_v47  ;;  %v388_v59 = vrot.slane %v380_v52, %v895_v20  ;;  %v415_v60 = vmul.f32 %v411_v14, %v411_v14 }
  0x2c   : > { %v395_v61 = vrot.slane %v381_v54, %v895_v20  ;;  %v416_v62 = vmul.f32 %v412_v32, %v412_v32  ;;  %v417_v63 = vmul.f32 %v413_v55, %v413_v55  ;;  %v418_v0 = vrot.slane %v414_v56, 4 }
  0x2d   : > { %340 = vst.msk [vmem:[#allocation2] ss:$8 sm:$0xf] %vm926_vm4, %v335_v58  ;;  %v424_v1 = vrot.slane %v415_v60, 4  ;;  %v476_v2 = vrot.slane %v938_v46, 4  ;;  %v482_v24 = vrot.slane %v940_v50, 4 }
  0x2e   : > { %v488_v4 = vrot.slane %v943_v53, 4  ;;  %v396_v5 = vcombine.low %v388_v59, %v395_v61  ;;  %v419_v6 = vadd.f32 %v418_v0, %v414_v56  ;;  %v430_v7 = vrot.slane %v416_v62, 4 }
  0x2f   : > { %v436_v8 = vrot.slane %v417_v63, 4  ;;  %v425_v10 = vadd.f32 %v424_v1, %v415_v60  ;;  %v477_v12 = vadd.f32 %v476_v2, %v938_v46  ;;  %v483_v13 = vadd.f32 %v482_v24, %v940_v50 }
  0x30   : > { %v489_v14 = vadd.f32 %v488_v4, %v943_v53  ;;  %v403_v19 = vrot.slane %v396_v5, %v895_v20  ;;  %v420_v25 = vrot.slane %v419_v6, 2  ;;  %v431_v26 = vadd.f32 %v430_v7, %v416_v62 }
  0x31   : > { %v437_v27 = vadd.f32 %v436_v8, %v417_v63  ;;  %v426_v28 = vrot.slane %v425_v10, 2  ;;  %v478_v29 = vrot.slane %v477_v12, 2  ;;  %v484_v30 = vrot.slane %v483_v13, 2 }
  0x32   : > { %v490_v31 = vrot.slane %v489_v14, 2  ;;  %v405_v3 = vadd.f32 %v403_v19, %v343_v9  ;;  %v421_v32 = vadd.f32 %v420_v25, %v419_v6  ;;  %v432_v33 = vrot.slane %v431_v26, 2 }
  0x33   : > { %v438_v34 = vrot.slane %v437_v27, 2  ;;  %v427_v21 = vadd.f32 %v426_v28, %v425_v10  ;;  %v479_v35 = vadd.f32 %v478_v29, %v477_v12  ;;  %v485_v36 = vadd.f32 %v484_v30, %v483_v13 }
  0x34   : > { %v491_v22 = vadd.f32 %v490_v31, %v489_v14  ;;  %406 = vst.msk [vmem:[#allocation2 + $0x1] ss:$8 sm:$0xf] %vm926_vm4, %v405_v3  ;;  %v422_v37 = vrot.slane %v421_v32, 1  ;;  %v433_v38 = vadd.f32 %v432_v33, %v431_v26  ;;  %v494_v40 = vrot.slane %v947_v57, 4 }
  0x35   : > { %v439_v39 = vadd.f32 %v438_v34, %v437_v27  ;;  %v428_v41 = vrot.slane %v427_v21, 1  ;;  %v480_v42 = vrot.slane %v479_v35, 1  ;;  %v486_v43 = vrot.slane %v485_v36, 1  ;;  %v409_v26 = vld [vmem:[#allocation2 + $0x2] ss:$8 sm:$0xf] }
  0x36   : > { %v492_v44 = vrot.slane %v491_v22, 1  ;;  %v423_v45 = vadd.f32 %v422_v37, %v421_v32  ;;  %v434_v47 = vrot.slane %v433_v38, 1  ;;  %v495_v48 = vadd.f32 %v494_v40, %v947_v57 }
  0x37   : > { %v440_v23 = vrot.slane %v439_v39, 1  ;;  %v429_v49 = vadd.f32 %v428_v41, %v427_v21  ;;  %v481_v51 = vadd.f32 %v480_v42, %v479_v35  ;;  %v487_v52 = vadd.f32 %v486_v43, %v485_v36 }
  0x38   : > { %v493_v54 = vadd.f32 %v492_v44, %v491_v22  ;;  %v435_v55 = vadd.f32 %v434_v47, %v433_v38  ;;  %v496_v58 = vrot.slane %v495_v48, 2  ;;  %v534_v59 = vmul.f32 %v938_v46, %v887_v15  ;;  %v475_v47 = vld [vmem:[#allocation2 + $0x3] ss:$8 sm:$0xf] }
  0x39   : > { %v441_v56 = vadd.f32 %v440_v23, %v439_v39  ;;  %v446_v60 = vcombine.low %v423_v45, %v429_v49  ;;  %v504_v61 = vcombine.low %v481_v51, %v487_v52  ;;  %v535_v62 = vmul.f32 %v940_v50, %v889_v16 }
  0x3a   : > { %v536_v63 = vmul.f32 %v943_v53, %v891_v17  ;;  %v497_v1 = vadd.f32 %v496_v58, %v495_v48  ;;  %v537_v2 = vmul.f32 %v947_v57, %v893_v18  ;;  %v538_v24 = vrot.slane %v534_v59, 4 }
  0x3b   : > { %v447_v0 = vcombine.low %v435_v55, %v441_v56  ;;  %v454_v4 = vrot.slane %v446_v60, %v895_v20  ;;  %v512_v5 = vrot.slane %v504_v61, %v895_v20  ;;  %v544_v6 = vrot.slane %v535_v62, 4 }
  0x3c   : > { %v550_v46 = vrot.slane %v536_v63, 4  ;;  %v498_v8 = vrot.slane %v497_v1, 1  ;;  %v539_v9 = vadd.f32 %v538_v24, %v534_v59  ;;  %v556_v50 = vrot.slane %v537_v2, 4 }
  0x3d   : > { %v461_v7 = vrot.slane %v447_v0, %v895_v20  ;;  %v545_v10 = vadd.f32 %v544_v6, %v535_v62  ;;  %v596_v53 = vrot.slane %v887_v15, 4  ;;  %v602_v13 = vrot.slane %v889_v16, 4 }
  0x3e   : > { %v551_v12 = vadd.f32 %v550_v46, %v536_v63  ;;  %v499_v57 = vadd.f32 %v498_v8, %v497_v1  ;;  %v540_v19 = vrot.slane %v539_v9, 2  ;;  %v557_v25 = vadd.f32 %v556_v50, %v537_v2  ;;  %v533_v46 = vld [vmem:[#allocation2 + $0x4] ss:$8 sm:$0xf] }
  0x3f   : > { %v462_v14 = vcombine.low %v454_v4, %v461_v7  ;;  %v546_v27 = vrot.slane %v545_v10, 2  ;;  %v597_v29 = vadd.f32 %v596_v53, %v887_v15  ;;  %v603_v30 = vadd.f32 %v602_v13, %v889_v16 }
  0x40   : > { %v552_v28 = vrot.slane %v551_v12, 2  ;;  %v505_v3 = vcombine.low %v493_v54, %v499_v57  ;;  %v541_v32 = vadd.f32 %v540_v19, %v539_v9  ;;  %v558_v33 = vrot.slane %v557_v25, 2  ;;  %v595_v57 = vld [vmem:[#allocation2 + $0x5] ss:$8 sm:$0xf] }
  0x41   : > { %v469_v31 = vrot.slane %v462_v14, %v895_v20  ;;  %v547_v34 = vadd.f32 %v546_v27, %v545_v10  ;;  %v598_v35 = vrot.slane %v597_v29, 2  ;;  %v604_v36 = vrot.slane %v603_v30, 2 }
  0x42   : > { %v553_v21 = vadd.f32 %v552_v28, %v551_v12  ;;  %v519_v37 = vrot.slane %v505_v3, %v895_v20  ;;  %v542_v38 = vrot.slane %v541_v32, 1  ;;  %v559_v39 = vadd.f32 %v558_v33, %v557_v25 }
  0x43   : > { %v471_v22 = vadd.f32 %v469_v31, %v409_v26  ;;  %v548_v40 = vrot.slane %v547_v34, 1  ;;  %v599_v42 = vadd.f32 %v598_v35, %v597_v29  ;;  %v605_v15 = vadd.f32 %v604_v36, %v603_v30 }
  0x44   : > { %v554_v41 = vrot.slane %v553_v21, 1  ;;  %v520_v16 = vcombine.low %v512_v5, %v519_v37  ;;  %v543_v43 = vadd.f32 %v542_v38, %v541_v32  ;;  %v560_v44 = vrot.slane %v559_v39, 1 }
  0x45   : > { %472 = vst.msk [vmem:[#allocation2 + $0x2] ss:$8 sm:$0xf] %vm926_vm4, %v471_v22  ;;  %v608_v45 = vrot.slane %v891_v17, 4  ;;  %v549_v23 = vadd.f32 %v548_v40, %v547_v34  ;;  %v600_v49 = vrot.slane %v599_v42, 1  ;;  %v606_v51 = vrot.slane %v605_v15, 1 }
  0x46   : > { %v555_v48 = vadd.f32 %v554_v41, %v553_v21  ;;  %v527_v52 = vrot.slane %v520_v16, %v895_v20  ;;  %v561_v54 = vadd.f32 %v560_v44, %v559_v39  ;;  %v614_v56 = vrot.slane %v893_v18, 4 }
  0x47   : > { %v609_v55 = vadd.f32 %v608_v45, %v891_v17  ;;  %v566_v58 = vcombine.low %v543_v43, %v549_v23  ;;  %v601_v0 = vadd.f32 %v600_v49, %v599_v42  ;;  %v607_v2 = vadd.f32 %v606_v51, %v605_v15 }
  0x48   : > { %v529_v59 = vadd.f32 %v527_v52, %v475_v47  ;;  %v567_v60 = vcombine.low %v555_v48, %v561_v54  ;;  %v615_v62 = vadd.f32 %v614_v56, %v893_v18 }
  0x49   : > { %v610_v61 = vrot.slane %v609_v55, 2  ;;  %v574_v63 = vrot.slane %v566_v58, %v895_v20  ;;  %v624_v18 = vcombine.low %v601_v0, %v607_v2 }
  0x4a   : > { %530 = vst.msk [vmem:[#allocation2 + $0x3] ss:$8 sm:$0xf] %vm926_vm4, %v529_v59  ;;  %v581_v1 = vrot.slane %v567_v60, %v895_v20  ;;  %v616_v4 = vrot.slane %v615_v62, 2 }
  0x4b   : > { %v611_v24 = vadd.f32 %v610_v61, %v609_v55  ;;  %v632_v53 = vrot.slane %v624_v18, %v895_v20 }
  0x4c   : > { %v582_v17 = vcombine.low %v574_v63, %v581_v1  ;;  %v617_v6 = vadd.f32 %v616_v4, %v615_v62 }
  0x4d   : > { %v612_v5 = vrot.slane %v611_v24, 1 }
  0x4e   : > { %v589_v7 = vrot.slane %v582_v17, %v895_v20  ;;  %v618_v9 = vrot.slane %v617_v6, 1 }
  0x4f   : > { %v613_v8 = vadd.f32 %v612_v5, %v611_v24 }
  0x50   : > { %v591_v50 = vadd.f32 %v589_v7, %v533_v46  ;;  %v619_v10 = vadd.f32 %v618_v9, %v617_v6 }
  0x52   : > { %592 = vst.msk [vmem:[#allocation2 + $0x4] ss:$8 sm:$0xf] %vm926_vm4, %v591_v50  ;;  %v625_v12 = vcombine.low %v613_v8, %v619_v10 }
  0x54   : > { %v639_v13 = vrot.slane %v625_v12, %v895_v20 }
  0x56   : > { %v640_v14 = vcombine.low %v632_v53, %v639_v13 }
  0x58   : > { %v647_v19 = vrot.slane %v640_v14, %v895_v20 }
  0x5a   : > { %v649_v25 = vadd.f32 %v647_v19, %v595_v57 }
  0x5c   : > { %650 = vst.msk [vmem:[#allocation2 + $0x5] ss:$8 sm:$0xf] %vm926_vm4, %v649_v25 }
  0x63   : > { %v655_v26 = vld [vmem:[#allocation2] sm:$0xff]  ;;  %v656_v27 = vld [vmem:[#allocation2 + $0x8] sm:$0xff]  ;;  %v657_v28 = vld [vmem:[#allocation2 + $0x10] sm:$0xff] }
  0x64   : > { %v659_v29 = vadd.f32 %v656_v27, %v655_v26  ;;  %v658_v30 = vld [vmem:[#allocation2 + $0x18] sm:$0xff] }
  0x66   : > { %v660_v31 = vadd.f32 %v659_v29, %v657_v28 }
  0x68   : > { %v661_v3 = vadd.f32 %v660_v31, %v658_v30 }
  0x6a   : > { %662 = vadd.xlane.f32.xlu0 %v661_v3 }
  0xf3   : > { %v663_v32 = vpop.xlane.xlu0 %662 }
  0xf4   : > { %664 = vst [vmem:[%s230_s24] sm:$0xff] %v663_v32 }
  0xf5 PF: > { %s12_s11 = sadd.s32 1, %s839_s11   ;;  %s1018_s9 = smov %s835_s10 }
  0xf6   : > { %p9_p5 = scmp.ge.s32.totalorder %s12_s11, 4   ;;  %s1019_s10 = smov %s1021_s12 }
  0xf8   :  { %11 = sbr.rel (!%p9_p5) target bundleno = 2 (0x2), region = 74 }

</bundles_post_ra>
